<compile_context>
chip_gen: v7x
topology: tpu7x:2x2x1
jax: 0.10.0
libtpu: 0.0.40
codegen_flags: <defaults>
</compile_context>

<pallas_src>
import functools

import jax
import jax.numpy as jnp
from jax.experimental import pallas as pl
from jax.experimental.pallas import tpu as pltpu


_LANE_CANDIDATES = (1024, 512, 256, 128)  # lane-dense slab widths (multiples of 128)
_TARGET_TILE_BYTES = 4 << 20              # ~4 MiB input tile; in+out double-buffered
                                          # = 16 MiB, under the 32 MiB limit below.
_VMEM_LIMIT_BYTES = 32 << 20              # raise v5e's 16 MiB scoped default; fits
                                          # physical VMEM on v5e/v6e (128 MiB) and
                                          # v7x (64 MiB per TC).


def _satlu_kernel(x_ref, o_ref, *, lower, upper):
    x = x_ref[...]
    lo = jnp.asarray(lower, x.dtype)
    hi = jnp.asarray(upper, x.dtype)
    o_ref[...] = jnp.minimum(jnp.maximum(x, lo), hi)


def _min_sublane(dtype) -> int:
    # Minimum sublane tile: 8 for 4-byte, 16 for 2-byte, 32 for 1-byte dtypes.
    itemsize = jnp.dtype(dtype).itemsize
    return max(8, 32 // max(itemsize, 1))


def _sanitize_bounds(lower, upper, dtype):
    # For integer dtypes, clamp the bounds to the representable range so the
    # cast inside the kernel can't wrap around (e.g. 255 -> -1 on int8),
    # keeping semantics consistent with torch.clamp / F.hardtanh.
    if jnp.issubdtype(jnp.dtype(dtype), jnp.integer):
        info = jnp.iinfo(dtype)
        lower = int(min(max(lower, info.min), info.max))
        upper = int(min(max(upper, info.min), info.max))
    return lower, upper


def _pallas_clamp_2d(x2d, lower, upper, donate):
    rows, lane = x2d.shape
    dtype = x2d.dtype
    itemsize = jnp.dtype(dtype).itemsize
    sub_min = _min_sublane(dtype)

    # ~4 MiB input tile, rounded down to a sublane multiple.
    block_rows = (_TARGET_TILE_BYTES // (lane * itemsize)) // sub_min * sub_min
    block_rows = max(sub_min, block_rows)

    if block_rows >= rows:
        if rows >= 2 * sub_min:
            # Keep at least 2 grid steps so dimension_semantics=("parallel",)
            # can shard the work across both v7x TensorCores.
            half = (rows + 1) // 2
            block_rows = ((half + sub_min - 1) // sub_min) * sub_min
        else:
            # Single full-extent block (always a legal tile shape).
            block_rows = rows
    grid = (pl.cdiv(rows, block_rows),)

    kernel = functools.partial(_satlu_kernel, lower=lower, upper=upper)
    return pl.pallas_call(
        kernel,
        out_shape=jax.ShapeDtypeStruct((rows, lane), dtype),
        grid=grid,
        in_specs=[pl.BlockSpec((block_rows, lane), lambda i: (i, 0))],
        out_specs=pl.BlockSpec((block_rows, lane), lambda i: (i, 0)),
        compiler_params=pltpu.CompilerParams(
            dimension_semantics=("parallel",),
            vmem_limit_bytes=_VMEM_LIMIT_BYTES,
        ),
        cost_estimate=pl.CostEstimate(
            flops=2 * rows * lane,                      # one max + one min per elem
            transcendentals=0,
            bytes_accessed=2 * rows * lane * itemsize,  # read + write, streaming
        ),
        input_output_aliases=({0: 0} if donate else {}),
    )(x2d)


def satlu(x, lower=0.0, upper=255.0, donate=False):
    """Elementwise clamp (F.hardtanh(x, lower, upper)) via a Pallas TPU kernel.

    Set donate=True to alias the input buffer onto the output (the JAX analogue
    of PyTorch's `inplace=True`) when the caller no longer needs `x`.
    """
    orig_shape = x.shape
    dtype = x.dtype
    total = x.size
    if total == 0:
        return x

    lower, upper = _sanitize_bounds(lower, upper, dtype)
    flat = x.reshape(-1)

    # Common case: widest lane-dense width that divides `total` exactly ->
    # one Pallas pass, no tail, no slice, no concatenate.
    lane = next((l for l in _LANE_CANDIDATES if total % l == 0), None)
    if lane is not None:
        out2d = _pallas_clamp_2d(
            flat.reshape(total // lane, lane), lower, upper, donate)
        return out2d.reshape(orig_shape)

    # Genuinely ragged total (not a multiple of 128): single padded Pallas pass
    # (pad < 128 elements) instead of prefix-slice + concatenate, which would
    # re-stream the whole output through HBM a second time.
    padded = -(-total // 128) * 128
    lane = next(l for l in _LANE_CANDIDATES if padded % l == 0)
    flat_p = jnp.pad(flat, (0, padded - total))
    out2d = _pallas_clamp_2d(
        flat_p.reshape(padded // lane, lane), lower, upper, donate)
    return out2d.reshape(-1)[:total].reshape(orig_shape)


if __name__ == "__main__":
    key = jax.random.PRNGKey(0)
    lower, upper = 0.0, 255.0

    # Primary NCHW input (like PyTorch), values well outside [0, 255].
    x = jax.random.uniform(key, (2, 4, 16, 16), dtype=jnp.float32,
                           minval=-300.0, maxval=600.0)
    y = jax.block_until_ready(satlu(x, lower, upper))
    ref = jnp.clip(x, lower, upper)
    assert y.shape == x.shape and y.dtype == x.dtype
    assert jnp.array_equal(y, ref), "mismatch vs reference clamp (f32)"

    # Ragged total (not a multiple of 128): exercises the single padded pass.
    x2 = jax.random.uniform(jax.random.PRNGKey(1), (3, 5, 7, 11),
                            dtype=jnp.float32, minval=-300.0, maxval=600.0)
    y2 = jax.block_until_ready(satlu(x2, lower, upper))
    assert jnp.array_equal(y2, jnp.clip(x2, lower, upper)), "mismatch (ragged path)"

    # bf16: exercises dtype-aware sublane sizing and the 2-block megacore split.
    x3 = jax.random.uniform(jax.random.PRNGKey(2), (4, 8, 32, 32),
                            dtype=jnp.bfloat16, minval=-300.0, maxval=600.0)
    y3 = jax.block_until_ready(satlu(x3, lower, upper))
    assert y3.dtype == x3.dtype
    assert jnp.array_equal(y3, jnp.clip(x3, jnp.bfloat16(lower),
                                        jnp.bfloat16(upper))), "mismatch (bf16)"

    # int8: bounds are sanitized (upper=255 clamps to 127 instead of wrapping).
    x4 = jax.random.randint(jax.random.PRNGKey(3), (4, 8, 32, 32),
                            -128, 128, dtype=jnp.int32).astype(jnp.int8)
    y4 = jax.block_until_ready(satlu(x4, lower, upper))
    assert y4.dtype == x4.dtype
    assert jnp.array_equal(y4, jnp.clip(x4, 0, 127)), "mismatch (int8 bounds)"

    print("KERNEL_OK")
</pallas_src>

<mosaic_0001>
module attributes {stable_mosaic.version = 11 : i64} {
  func.func @_satlu_kernel(%arg0: i32, %arg1: memref<2x1024xf32, #tpu.memory_space<vmem>>, %arg2: memref<2x1024xf32, #tpu.memory_space<vmem>>) attributes {dimension_semantics = [#tpu.dimension_semantics<parallel>], iteration_bounds = array<i64: 1>, scalar_prefetch = 0 : i64, scratch_operands = 0 : i64, tpu.core_type = #tpu.core_type<tc>, window_params = [{transform_indices = @transform_0, window_bounds = array<i64: 2, 1024>}, {transform_indices = @transform_1, window_bounds = array<i64: 2, 1024>}]} {
    %c0 = arith.constant 0 : index
    %c0_0 = arith.constant 0 : index
    %0 = vector.load %arg1[%c0, %c0_0] : memref<2x1024xf32, #tpu.memory_space<vmem>>, vector<2x1024xf32>
    %cst = arith.constant 0.000000e+00 : f32
    %1 = vector.broadcast %cst : f32 to vector<2x1024xf32>
    %2 = arith.maximumf %0, %1 : vector<2x1024xf32>
    %cst_1 = arith.constant 2.550000e+02 : f32
    %3 = vector.broadcast %cst_1 : f32 to vector<2x1024xf32>
    %4 = arith.minimumf %2, %3 : vector<2x1024xf32>
    %c0_2 = arith.constant 0 : index
    %c0_3 = arith.constant 0 : index
    %5 = vector.load %arg2[%c0_2, %c0_3] : memref<2x1024xf32, #tpu.memory_space<vmem>>, vector<2x1024xf32>
    tpu.vector_store %arg2[%c0_2, %c0_3], %4 {strides = array<i32>} : memref<2x1024xf32, #tpu.memory_space<vmem>>, vector<2x1024xf32>,
    return
  }
  func.func @transform_0(%arg0: i32) -> (i32, i32) {
    %c0_i32 = arith.constant 0 : i32
    %c0_i32_0 = arith.constant 0 : i32
    return %arg0, %c0_i32 : i32, i32
  }
  func.func @transform_1(%arg0: i32) -> (i32, i32) {
    %c0_i32 = arith.constant 0 : i32
    %c0_i32_0 = arith.constant 0 : i32
    return %arg0, %c0_i32 : i32, i32
  }
}

</mosaic_0001>

<bundles_post_ra>
// kernel: tpu_custom_call.1
= control target key start
LH: loop header
LB: loop body
LE: loop exit
PB: predicated region body
PF: predicated region fallthrough
CT: control target
= control target key end

     0   :  { %6 = vsyncpa [#allocation3], 0  ;;  %s130_s0 = inlined_call_operand.hbm [shape: f32[2,1024], index: 0, kind: input, shape index: {}]   ;;  %s131_s1 = inlined_call_operand.hbm [shape: f32[2,1024], index: 1, kind: output, shape index: {}]  }
   0x1   :  { %7 = vsyncpa [#allocation4], 0  ;;  %s94_s6 = smov [#allocation2]   ;;  %s46_s10 = scalar_lea.hbm %s130_s0, 256 }
   0x2   :  { %s14_s7 = sshll.u32 %s94_s6, 4  ;;  %p47_p0 = scmp.ne.s32.totalorder %s130_s0, %s46_s10  ;;  %s15_s7 = int_to_ptr.vmem [resolvable:$true] %s14_s7 }
   0x3   :  { %p50_p1 = scmp.lt.u32.totalorder %s46_s10, %s130_s0 }
   0x5   :  { %p52_p2 = pnand %p50_p1, %p47_p0 }
   0x7   :  { %55 = shalt.err (!%p52_p2)
}
   0x8   :  { %s56_s15 = scalar_lea.vmem %s15_s7, 256  ;;  %p61_p4 = scmp.lt.s32.totalorder %s15_s7, %s15_s7 }
   0x9   :  { %p57_p3 = scmp.ne.s32.totalorder %s15_s7, %s56_s15  ;;  %p62_p5 = scmp.lt.s32.totalorder %s56_s15, %s56_s15 }
   0xb   :  { %p63_p6 = por %p62_p5, %p61_p4 }
   0xd   :  { %p64_p7 = pnand %p63_p6, %p57_p3 }
   0xf   :  { %67 = shalt.err (!%p64_p7)
}
  0x10   :  { %17 = dma.hbm_to_vmem [thread:$0]  %s130_s0, 256, %s15_s7, [#allocation3]  }
  0x11   :  { %90 = dma.done.wait [#allocation3], 256  }
  0x12   :  { %91 = vsyncadd [#allocation3], 4294967040  ;;  %v21_v0 = vld [vmem:[#allocation2] sm:$0xff]  ;;  %v22_v1 = vld [vmem:[#allocation2 + $0x8] sm:$0xff]  ;;  %s95_s18 = smov [#allocation5]  }
  0x13   :  { %s35_s19 = sshll.u32 %s95_s18, 4  ;;  %v23_v2 = vmax.f32 %v21_v0, 0.0  ;;  %v24_v3 = vmax.f32 %v22_v1, 0.0  ;;  %s36_s19 = int_to_ptr.vmem [resolvable:$true] %s35_s19 }
  0x14   :  { %s68_s20 = scalar_lea.vmem %s36_s19, 256  ;;  %p73_p9 = scmp.lt.s32.totalorder %s36_s19, %s36_s19 }
  0x15   :  { %v25_v4 = vmin.f32 %v23_v2, 255.0  ;;  %v26_v5 = vmin.f32 %v24_v3, 255.0  ;;  %p69_p8 = scmp.ne.s32.totalorder %s36_s19, %s68_s20  ;;  %p74_p10 = scmp.lt.s32.totalorder %s68_s20, %s68_s20 }
  0x17   :  { %27 = vst [vmem:[#allocation5] sm:$0xff] %v25_v4  ;;  %28 = vst [vmem:[#allocation5 + $0x8] sm:$0xff] %v26_v5  ;;  %p75_p11 = por %p74_p10, %p73_p9 }
  0x19   :  { %p76_p12 = pnand %p75_p11, %p69_p8 }
  0x1b   :  { %79 = shalt.err (!%p76_p12)
}
  0x1c   :  { %s80_s22 = scalar_lea.hbm %s131_s1, 256 }
  0x1d   :  { %p81_p13 = scmp.ne.s32.totalorder %s131_s1, %s80_s22  ;;  %p84_p0 = scmp.lt.u32.totalorder %s80_s22, %s131_s1 }
  0x1f   :  { %p86_p1 = pnand %p84_p0, %p81_p13 }
  0x21   :  { %89 = shalt.err (!%p86_p1)
}
  0x22   :  { %38 = dma.vmem_to_hbm [thread:$0]  %s36_s19, 256, %s131_s1, [#allocation4]  }
  0x23   :  { %92 = dma.done.wait [#allocation4], 256  }
  0x24   :  { %93 = vsyncadd [#allocation4], 4294967040 }
  0x25   :  { %42 = vsyncpa [#allocation3], 1 }
  0x26   :  { %43 = vsyncpa [#allocation4], 1 }

</bundles_post_ra>
